<compile_context>
chip_gen: v7x
topology: tpu7x:2x2x1
jax: 0.10.0
libtpu: 0.0.40
codegen_flags: <defaults>
</compile_context>

<pallas_src>
import functools

import jax
import jax.numpy as jnp
from jax.experimental import pallas as pl
from jax.experimental.pallas import tpu as pltpu

# Hidden dims that the PyTorch module pulls from module-level constants.
MLP_HIDDEN_DIM_1 = 64
MLP_HIDDEN_DIM_2 = 32

LANE = 128      # TPU lane width: hidden dims are zero-padded to this.
SUBLANE = 8     # sublane granularity for the batch tile.


def _mlp_kernel(x_ref, w1_ref, w2_ref, w3_ref, b12_ref, b3_ref, o_ref):
    """One batch tile through three VMEM-resident layers.

    x_ref:  (TB, dim)        native-width input tile (no lane padding in HBM)
    w1_ref: (dim, 128)       fc1 weight, output dim zero-padded 64 -> 128
    w2_ref: (128, 128)       fc2 weight, zero-padded (64,32) -> (128,128)
    w3_ref: (128, out_dim)   fc3 weight, input dim zero-padded 32 -> 128
    b12_ref:(2, 128)         f32 biases for fc1/fc2 (zero-padded)
    b3_ref: (1, out_dim)     f32 bias for fc3
    o_ref:  (TB, out_dim)    true-width output tile (no lane padding)

    Zero padding keeps the math exact: padded hidden lanes see zero weight
    columns + zero bias (ReLU(0)=0) and feed zero weight rows downstream.
    """
    cdt = w1_ref.dtype  # compute dtype of the MXU operands (f32 or bf16)

    # Layer 1: x @ W1 + b1, ReLU. MXU with f32 accumulation; bias/ReLU in f32.
    h = jnp.dot(x_ref[...].astype(cdt), w1_ref[...],
                preferred_element_type=jnp.float32)
    h = jnp.maximum(h + b12_ref[0:1, :], 0.0)

    # Layer 2: h1 @ W2 + b2, ReLU.
    h = jnp.dot(h.astype(cdt), w2_ref[...],
                preferred_element_type=jnp.float32)
    h = jnp.maximum(h + b12_ref[1:2, :], 0.0)

    # Layer 3: h2 @ W3 + b3 (no activation). Store at true output width.
    y = jnp.dot(h.astype(cdt), w3_ref[...],
                preferred_element_type=jnp.float32)
    o_ref[...] = (y + b3_ref[...]).astype(o_ref.dtype)


def _pad2d(a, rows, cols):
    return jnp.pad(a, ((0, rows - a.shape[0]), (0, cols - a.shape[1])))


def _pad1d(a, n):
    a = jnp.asarray(a).reshape(-1)
    return jnp.pad(a, (0, n - a.shape[0]))


def prepare_mlp_params(w1, b1, w2, b2, w3, b3, param_dtype=jnp.float32):
    """Pad/cast the parameters ONCE (hoisted out of the per-call path).

    wi are [in_i, out_i] (transposed vs. PyTorch storage).  Weights are cast
    to `param_dtype` (use jnp.bfloat16 on v6e/v7x for ~2x HBM-byte reduction);
    biases are kept f32 so the bias+ReLU path stays f32 everywhere (v5e-safe).
    """
    dim = w1.shape[0]
    out_dim = w3.shape[1]
    w1p = _pad2d(w1, dim, LANE).astype(param_dtype)       # (dim, 128)
    w2p = _pad2d(w2, LANE, LANE).astype(param_dtype)       # (128, 128)
    w3p = _pad2d(w3, LANE, out_dim).astype(param_dtype)    # (128, out_dim)
    b12 = jnp.stack([_pad1d(b1, LANE),
                     _pad1d(b2, LANE)]).astype(jnp.float32)  # (2, 128)
    b3p = jnp.asarray(b3, jnp.float32).reshape(1, out_dim)   # (1, out_dim)
    return (w1p, w2p, w3p, b12, b3p)


@functools.partial(jax.jit, static_argnames=("tb",))
def mlp_forward(x, params, *, tb=4096):
    """relu(x@W1+b1) -> relu(.@W2+b2) -> .@W3+b3.

    x:      [B, dim]  (f32, or bf16 if the params were prepared in bf16)
    params: output of prepare_mlp_params(...)
    Returns [B, out_dim] in x.dtype.
    """
    w1p, w2p, w3p, b12, b3p = params
    B, dim = x.shape
    out_dim = w3p.shape[1]

    # ---- Batch tile selection. ---------------------------------------------
    b_pad8 = -(-B // SUBLANE) * SUBLANE
    TB = max(SUBLANE, (min(tb, b_pad8) // SUBLANE) * SUBLANE)
    # v7x megacore: guarantee >= 2 batch tiles whenever possible so the
    # "parallel" grid axis can be split across both TensorCores.
    if b_pad8 >= 2 * SUBLANE:
        half = -(-(b_pad8 // 2) // SUBLANE) * SUBLANE
        TB = min(TB, half)
    # VMEM safety clamp (double-buffered x + out tiles within ~40 MiB),
    # relevant only for very large feature dims / v5e headroom.
    xbytes = jnp.dtype(x.dtype).itemsize
    max_tb_vmem = max(SUBLANE,
                      ((40 << 20) // (2 * (dim + out_dim) * xbytes)
                       // SUBLANE) * SUBLANE)
    TB = min(TB, max_tb_vmem)

    grid = -(-b_pad8 // TB)
    B_pad = grid * TB
    if B_pad != B:
        # Row padding only (no lane padding); skipped entirely when B % TB == 0.
        x = jnp.pad(x, ((0, B_pad - B), (0, 0)))

    # ---- Scoped-VMEM limit covering the double-buffered blocks + weights. ---
    pbytes = jnp.dtype(w1p.dtype).itemsize
    blk_bytes = 2 * TB * (dim + out_dim) * xbytes
    wt_bytes = 2 * pbytes * (w1p.size + w2p.size + w3p.size) \
        + 2 * 4 * (b12.size + b3p.size)
    vmem_limit = int(min(64 << 20, max(32 << 20,
                                       blk_bytes + wt_bytes + (4 << 20))))

    const2d = lambda i: (0, 0)
    out_pad = pl.pallas_call(
        _mlp_kernel,
        out_shape=jax.ShapeDtypeStruct((B_pad, out_dim), x.dtype),
        grid_spec=pltpu.PrefetchScalarGridSpec(
            num_scalar_prefetch=0,
            grid=(grid,),
            in_specs=[
                pl.BlockSpec((TB, dim), lambda i: (i, 0)),     # batch-tiled x
                pl.BlockSpec((dim, LANE), const2d),            # resident W1
                pl.BlockSpec((LANE, LANE), const2d),            # resident W2
                pl.BlockSpec((LANE, out_dim), const2d),         # resident W3
                pl.BlockSpec((2, LANE), const2d),               # resident b1/b2
                pl.BlockSpec((1, out_dim), const2d),            # resident b3
            ],
            out_specs=pl.BlockSpec((TB, out_dim), lambda i: (i, 0)),
        ),
        compiler_params=pltpu.CompilerParams(
            # Batch tiles are independent -> megacore-splittable on v7x.
            dimension_semantics=("parallel",),
            vmem_limit_bytes=vmem_limit),
    )(x, w1p, w2p, w3p, b12, b3p)

    # Strip batch-row padding only (lane width is already exact).
    return out_pad if B_pad == B else out_pad[:B]


def init_linear(key, fan_in, fan_out, dtype=jnp.float32):
    """Deterministic init mimicking torch.nn.Linear (uniform +/- 1/sqrt(fan_in)).
    Weight returned as [fan_in, fan_out] (transposed vs. PyTorch storage)."""
    kw, kb = jax.random.split(key)
    bound = 1.0 / jnp.sqrt(fan_in)
    w = jax.random.uniform(kw, (fan_in, fan_out), dtype, -bound, bound)
    b = jax.random.uniform(kb, (fan_out,), dtype, -bound, bound)
    return w, b


if __name__ == "__main__":
    key = jax.random.PRNGKey(0)
    k_x, k1, k2, k3 = jax.random.split(key, 4)

    batch, dim, out_dim = 24, 32, 16

    x = jax.random.normal(k_x, (batch, dim), jnp.float32)
    w1, b1 = init_linear(k1, dim, MLP_HIDDEN_DIM_1)
    w2, b2 = init_linear(k2, MLP_HIDDEN_DIM_1, MLP_HIDDEN_DIM_2)
    w3, b3 = init_linear(k3, MLP_HIDDEN_DIM_2, out_dim)

    # Pure-JAX reference of the same math.
    ref = jnp.maximum(x @ w1 + b1, 0.0)
    ref = jnp.maximum(ref @ w2 + b2, 0.0)
    ref = ref @ w3 + b3

    # f32 path (exactly matches the PyTorch module numerics).  With batch=24
    # the tile logic picks TB=16 -> grid=2, exercising the pipelined grid, the
    # megacore split and the batch-row padding path at small test shapes.
    params_f32 = prepare_mlp_params(w1, b1, w2, b2, w3, b3, jnp.float32)
    y = mlp_forward(x, params_f32)
    jax.block_until_ready(y)
    assert y.shape == (batch, out_dim)
    assert jnp.allclose(y, ref, atol=1e-5, rtol=1e-5), "f32 mismatch vs reference"

    # bf16 data path (recommended on v6e/v7x): bf16 x / weights, f32 MXU
    # accumulation, f32 bias+ReLU.  Loose tolerance for bf16 rounding.
    params_bf16 = prepare_mlp_params(w1, b1, w2, b2, w3, b3, jnp.bfloat16)
    y_bf16 = mlp_forward(x.astype(jnp.bfloat16), params_bf16)
    jax.block_until_ready(y_bf16)
    assert y_bf16.shape == (batch, out_dim)
    assert jnp.allclose(y_bf16.astype(jnp.float32), ref, atol=5e-2, rtol=5e-2), \
        "bf16 mismatch vs reference"

    print("KERNEL_OK")
</pallas_src>

<mosaic_0001>
module attributes {stable_mosaic.version = 11 : i64} {
  func.func @_mlp_kernel(%arg0: i32, %arg1: memref<16x32xf32, #tpu.memory_space<vmem>>, %arg2: memref<32x128xf32, #tpu.memory_space<vmem>>, %arg3: memref<128x128xf32, #tpu.memory_space<vmem>>, %arg4: memref<128x16xf32, #tpu.memory_space<vmem>>, %arg5: memref<2x128xf32, #tpu.memory_space<vmem>>, %arg6: memref<1x16xf32, #tpu.memory_space<vmem>>, %arg7: memref<16x16xf32, #tpu.memory_space<vmem>>) attributes {dimension_semantics = [#tpu.dimension_semantics<parallel>], iteration_bounds = array<i64: 2>, scalar_prefetch = 0 : i64, scratch_operands = 0 : i64, tpu.core_type = #tpu.core_type<tc>, window_params = [{transform_indices = @transform_0, window_bounds = array<i64: 16, 32>}, {pipeline_mode = #tpu.pipeline_mode<synchronous>, transform_indices = @transform_1, window_bounds = array<i64: 32, 128>}, {pipeline_mode = #tpu.pipeline_mode<synchronous>, transform_indices = @transform_2, window_bounds = array<i64: 128, 128>}, {pipeline_mode = #tpu.pipeline_mode<synchronous>, transform_indices = @transform_3, window_bounds = array<i64: 128, 16>}, {pipeline_mode = #tpu.pipeline_mode<synchronous>, transform_indices = @transform_4, window_bounds = array<i64: 2, 128>}, {pipeline_mode = #tpu.pipeline_mode<synchronous>, transform_indices = @transform_5, window_bounds = array<i64: 1, 16>}, {transform_indices = @transform_6, window_bounds = array<i64: 16, 16>}]} {
    %c0 = arith.constant 0 : index
    %c0_0 = arith.constant 0 : index
    %0 = vector.load %arg1[%c0, %c0_0] : memref<16x32xf32, #tpu.memory_space<vmem>>, vector<16x32xf32>
    %c0_1 = arith.constant 0 : index
    %c0_2 = arith.constant 0 : index
    %1 = vector.load %arg2[%c0_1, %c0_2] : memref<32x128xf32, #tpu.memory_space<vmem>>, vector<32x128xf32>
    %cst = arith.constant dense<0.000000e+00> : vector<16x128xf32>
    %2 = tpu.matmul %0, %1, %cst {dimension_numbers = #tpu.dot_dimension_numbers<[1], [0], [0], [1], [0, 0, 1, 1], [], []>} : vector<16x32xf32>, vector<32x128xf32>, vector<16x128xf32> -> vector<16x128xf32>
    %c0_3 = arith.constant 0 : index
    %c0_4 = arith.constant 0 : index
    %3 = vector.load %arg5[%c0_3, %c0_4] : memref<2x128xf32, #tpu.memory_space<vmem>>, vector<1x128xf32>
    %4 = vector.broadcast %3 : vector<1x128xf32> to vector<16x128xf32>
    %5 = arith.addf %2, %4 : vector<16x128xf32>
    %cst_5 = arith.constant 0.000000e+00 : f32
    %6 = vector.broadcast %cst_5 : f32 to vector<16x128xf32>
    %7 = arith.maximumf %5, %6 : vector<16x128xf32>
    %c0_6 = arith.constant 0 : index
    %c0_7 = arith.constant 0 : index
    %8 = vector.load %arg3[%c0_6, %c0_7] : memref<128x128xf32, #tpu.memory_space<vmem>>, vector<128x128xf32>
    %cst_8 = arith.constant dense<0.000000e+00> : vector<16x128xf32>
    %9 = tpu.matmul %7, %8, %cst_8 {dimension_numbers = #tpu.dot_dimension_numbers<[1], [0], [0], [1], [0, 0, 1, 1], [], []>} : vector<16x128xf32>, vector<128x128xf32>, vector<16x128xf32> -> vector<16x128xf32>
    %c1 = arith.constant 1 : index
    %c0_9 = arith.constant 0 : index
    %10 = vector.load %arg5[%c1, %c0_9] : memref<2x128xf32, #tpu.memory_space<vmem>>, vector<1x128xf32>
    %11 = vector.broadcast %10 : vector<1x128xf32> to vector<16x128xf32>
    %12 = arith.addf %9, %11 : vector<16x128xf32>
    %cst_10 = arith.constant 0.000000e+00 : f32
    %13 = vector.broadcast %cst_10 : f32 to vector<16x128xf32>
    %14 = arith.maximumf %12, %13 : vector<16x128xf32>
    %c0_11 = arith.constant 0 : index
    %c0_12 = arith.constant 0 : index
    %15 = vector.load %arg4[%c0_11, %c0_12] : memref<128x16xf32, #tpu.memory_space<vmem>>, vector<128x16xf32>
    %cst_13 = arith.constant dense<0.000000e+00> : vector<16x16xf32>
    %16 = tpu.matmul %14, %15, %cst_13 {dimension_numbers = #tpu.dot_dimension_numbers<[1], [0], [0], [1], [0, 0, 1, 1], [], []>} : vector<16x128xf32>, vector<128x16xf32>, vector<16x16xf32> -> vector<16x16xf32>
    %c0_14 = arith.constant 0 : index
    %c0_15 = arith.constant 0 : index
    %17 = vector.load %arg6[%c0_14, %c0_15] : memref<1x16xf32, #tpu.memory_space<vmem>>, vector<1x16xf32>
    %18 = vector.broadcast %17 : vector<1x16xf32> to vector<16x16xf32>
    %19 = arith.addf %16, %18 : vector<16x16xf32>
    %c0_16 = arith.constant 0 : index
    %c0_17 = arith.constant 0 : index
    %20 = vector.load %arg7[%c0_16, %c0_17] : memref<16x16xf32, #tpu.memory_space<vmem>>, vector<16x16xf32>
    tpu.vector_store %arg7[%c0_16, %c0_17], %19 {strides = array<i32>} : memref<16x16xf32, #tpu.memory_space<vmem>>, vector<16x16xf32>,
    return
  }
  func.func @transform_0(%arg0: i32) -> (i32, i32) {
    %c0_i32 = arith.constant 0 : i32
    %c0_i32_0 = arith.constant 0 : i32
    return %arg0, %c0_i32 : i32, i32
  }
  func.func @transform_1(%arg0: i32) -> (i32, i32) {
    %c0_i32 = arith.constant 0 : i32
    %c0_i32_0 = arith.constant 0 : i32
    %c0_i32_1 = arith.constant 0 : i32
    return %c0_i32, %c0_i32_0 : i32, i32
  }
  func.func @transform_2(%arg0: i32) -> (i32, i32) {
    %c0_i32 = arith.constant 0 : i32
    %c0_i32_0 = arith.constant 0 : i32
    %c0_i32_1 = arith.constant 0 : i32
    return %c0_i32, %c0_i32_0 : i32, i32
  }
  func.func @transform_3(%arg0: i32) -> (i32, i32) {
    %c0_i32 = arith.constant 0 : i32
    %c0_i32_0 = arith.constant 0 : i32
    %c0_i32_1 = arith.constant 0 : i32
    return %c0_i32, %c0_i32_0 : i32, i32
  }
  func.func @transform_4(%arg0: i32) -> (i32, i32) {
    %c0_i32 = arith.constant 0 : i32
    %c0_i32_0 = arith.constant 0 : i32
    %c0_i32_1 = arith.constant 0 : i32
    return %c0_i32, %c0_i32_0 : i32, i32
  }
  func.func @transform_5(%arg0: i32) -> (i32, i32) {
    %c0_i32 = arith.constant 0 : i32
    %c0_i32_0 = arith.constant 0 : i32
    %c0_i32_1 = arith.constant 0 : i32
    return %c0_i32, %c0_i32_0 : i32, i32
  }
  func.func @transform_6(%arg0: i32) -> (i32, i32) {
    %c0_i32 = arith.constant 0 : i32
    %c0_i32_0 = arith.constant 0 : i32
    return %arg0, %c0_i32 : i32, i32
  }
}

</mosaic_0001>

<bundles_post_ra>
// kernel: mlp_forward.1
= control target key start
LH: loop header
LB: loop body
LE: loop exit
PB: predicated region body
PF: predicated region fallthrough
CT: control target
= control target key end

     0   :  { %s867_s21 = smov 0   ;;  %s1008_s0 = inlined_call_operand.vmem [shape: f32[32,32], index: 0, kind: input, shape index: {}]   ;;  %s1009_s1 = inlined_call_operand.vmem [shape: f32[32,128], index: 1, kind: input, shape index: {}]   ;;  %s1010_s2 = inlined_call_operand.vmem [shape: f32[128,128], index: 2, kind: input, shape index: {}]   ;;  %s1011_s3 = inlined_call_operand.vmem [shape: f32[128,16], index: 3, kind: input, shape index: {}]   ;;  %s1012_s4 = inlined_call_operand.vmem [shape: f32[2,128], index: 4, kind: input, shape index: {}]   ;;  %s1013_s5 = inlined_call_operand.vmem [shape: f32[1,16], index: 5, kind: input, shape index: {}]   ;;  %s1014_s6 = inlined_call_operand.vmem [shape: f32[32,16], index: 6, kind: output, shape index: {}]  }
   0x1 LB: > { %s605_s22 = sadd.s32 4294967295, %s830_s21   ;;  %p609_p0 = scmp.ge.s32.totalorder %s830_s21, 1  ;;  %s830_s21 = sphi %s867_s21, %s16_s21  }
   0x2   : > { %p213_p1 = scmp.lt.s32.totalorder %s830_s21, 3 }
   0x4   : > { %p214_p2 = pnand %p609_p0, %p213_p1 }
   0x5   : > { %v257_v0 = vld [vmem:[%s1009_s1] sm:$0xff] (!%p214_p2)  ;;  %v258_v1 = vld [vmem:[%s1009_s1 + $0x8] sm:$0xff] (!%p214_p2)  ;;  %v259_v2 = vld [vmem:[%s1009_s1 + $0x10] sm:$0xff] (!%p214_p2)  ;;  %s610_s29 = sshll.u32 (!%p214_p2), %s605_s22, 1  ;;  %vm266_vm0 = vcmask (!%p214_p2), 261120   ;;  %vm546_vm1 = vcmask (!%p214_p2), 130048  }
   0x6   : > { %217 = sbr.rel (%p214_p2) target bundleno = 670 (0x29e), region = 44  ;;  %v744_v3 = vpack.c.bf16 (!%p214_p2), %v258_v1, %v257_v0  ;;  %v260_v4 = vld [vmem:[%s1009_s1 + $0x18] sm:$0xff] (!%p214_p2)  ;;  %p244_p3 = scmp.lt.s32.totalorder (!%p214_p2), %s610_s29, 3  ;;  %v350_v5 = vld [vmem:[%s1010_s2] sm:$0xff] (!%p214_p2)  ;;  %v351_v6 = vld [vmem:[%s1010_s2 + $0x8] sm:$0xff] (!%p214_p2) }
   0x7   : > { %v748_v7 = vpack.c.bf16 (!%p214_p2), %v260_v4, %v259_v2  ;;  %v752_v8 = vpack.c.bf16 (!%p214_p2), %v351_v6, %v350_v5  ;;  %v352_v9 = vld [vmem:[%s1010_s2 + $0x10] sm:$0xff] (!%p214_p2)  ;;  %v353_v10 = vld [vmem:[%s1010_s2 + $0x18] sm:$0xff] (!%p214_p2)  ;;  %v354_v12 = vld [vmem:[%s1010_s2 + $0x20] sm:$0xff] (!%p214_p2) }
   0x8   : > { %745 = vmatprep.subr.bf16.mxu0 (!%p214_p2), %v744_v3  ;;  %v756_v11 = vpack.c.bf16 (!%p214_p2), %v353_v10, %v352_v9  ;;  %v355_v13 = vld [vmem:[%s1010_s2 + $0x28] sm:$0xff] (!%p214_p2)  ;;  %v356_v16 = vld [vmem:[%s1010_s2 + $0x30] sm:$0xff] (!%p214_p2)  ;;  %v357_v17 = vld [vmem:[%s1010_s2 + $0x38] sm:$0xff] (!%p214_p2) }
   0x9   : > { %747 = vmatpush3.bf16.msra.mxu0 (!%p214_p2), %v744_v3  ;;  %753 = vmatprep.subr.bf16.mxu1 (!%p214_p2), %v752_v8  ;;  %v760_v14 = vpack.c.bf16 (!%p214_p2), %v355_v13, %v354_v12  ;;  %v764_v19 = vpack.c.bf16 (!%p214_p2), %v357_v17, %v356_v16  ;;  %v358_v20 = vld [vmem:[%s1010_s2 + $0x40] sm:$0xff] (!%p214_p2)  ;;  %v359_v21 = vld [vmem:[%s1010_s2 + $0x48] sm:$0xff] (!%p214_p2)  ;;  %v360_v23 = vld [vmem:[%s1010_s2 + $0x50] sm:$0xff] (!%p214_p2) }
   0xa   : > { %749 = vmatprep.subr.bf16.mxu0 (!%p214_p2), %v748_v7  ;;  %755 = vmatpush3.bf16.msra.mxu1 (!%p214_p2), %v752_v8  ;;  %v768_v22 = vpack.c.bf16 (!%p214_p2), %v359_v21, %v358_v20  ;;  %v361_v24 = vld [vmem:[%s1010_s2 + $0x58] sm:$0xff] (!%p214_p2)  ;;  %v362_v26 = vld [vmem:[%s1010_s2 + $0x60] sm:$0xff] (!%p214_p2)  ;;  %v363_v27 = vld [vmem:[%s1010_s2 + $0x68] sm:$0xff] (!%p214_p2) }
   0xb   : > { %757 = vmatprep.subr.bf16.mxu1 (!%p214_p2), %v756_v11  ;;  %v772_v25 = vpack.c.bf16 (!%p214_p2), %v361_v24, %v360_v23  ;;  %v776_v28 = vpack.c.bf16 (!%p214_p2), %v363_v27, %v362_v26  ;;  %v364_v29 = vld [vmem:[%s1010_s2 + $0x70] sm:$0xff] (!%p214_p2)  ;;  %v365_v30 = vld [vmem:[%s1010_s2 + $0x78] sm:$0xff] (!%p214_p2)  ;;  %v448_v32 = vld [vmem:[%s1011_s3] sm:$0xff] (!%p214_p2) }
   0xc   : > { %v780_v31 = vpack.c.bf16 (!%p214_p2), %v365_v30, %v364_v29  ;;  %v449_v33 = vld [vmem:[%s1011_s3 + $0x8] sm:$0xff] (!%p214_p2)  ;;  %v450_v34 = vld [vmem:[%s1011_s3 + $0x10] sm:$0xff] (!%p214_p2)  ;;  %v451_v36 = vld [vmem:[%s1011_s3 + $0x18] sm:$0xff] (!%p214_p2) }
   0xd   : > { %s1016_s29 = smov (!%p244_p3, %s610_s29), 3  ;;  %751 = vmatpush3.bf16.msra.mxu0 %v748_v7  ;;  %v784_v35 = vpack.c.bf16 %v449_v33, %v448_v32  ;;  %v788_v37 = vpack.c.bf16 %v451_v36, %v450_v34  ;;  %v452_v38 = vld [vmem:[%s1011_s3 + $0x20] sm:$0xff]  ;;  %v453_v39 = vld [vmem:[%s1011_s3 + $0x28] sm:$0xff]  ;;  %v454_v41 = vld [vmem:[%s1011_s3 + $0x30] sm:$0xff] }
   0xe   : > { %s611_s20 = sshll.u32 %s1016_s29, 3  ;;  %759 = vmatpush3.bf16.msra.mxu1 %v756_v11  ;;  %v792_v40 = vpack.c.bf16 %v453_v39, %v452_v38  ;;  %v455_v42 = vld [vmem:[%s1011_s3 + $0x38] sm:$0xff]  ;;  %v456_v44 = vld [vmem:[%s1011_s3 + $0x40] sm:$0xff]  ;;  %v457_v45 = vld [vmem:[%s1011_s3 + $0x48] sm:$0xff] }
   0xf   : > { %s247_s24 = scalar_lea.vmem %s1008_s0, %s611_s20  ;;  %761 = vmatprep.subr.bf16.mxu1 %v760_v14  ;;  %785 = vmatprep.subr.bf16.mxu0 %v784_v35  ;;  %v796_v43 = vpack.c.bf16 %v455_v42, %v454_v41  ;;  %v800_v46 = vpack.c.bf16 %v457_v45, %v456_v44  ;;  %v458_v47 = vld [vmem:[%s1011_s3 + $0x50] sm:$0xff]  ;;  %v459_v48 = vld [vmem:[%s1011_s3 + $0x58] sm:$0xff]  ;;  %v460_v50 = vld [vmem:[%s1011_s3 + $0x60] sm:$0xff]  ;;  %s253_s22 = scalar_lea.vmem %s1014_s6, %s611_s20 }
  0x10   : > { %v255_v15 = vld [vmem:[%s247_s24] sm:$0xff]  ;;  %v256_v18 = vld [vmem:[%s247_s24 + $0x8] sm:$0xff]  ;;  %v804_v49 = vpack.c.bf16 %v459_v48, %v458_v47  ;;  %v462_v60 = vld [vmem:[%s1011_s3 + $0x70] sm:$0xff] }
  0x11   : > { %671 = vmatprep.mubr.msk.f32.mxu0 %vm266_vm0, %v255_v15  ;;  %v461_v51 = vld [vmem:[%s1011_s3 + $0x68] sm:$0xff]  ;;  %v614_v53 = vld [vmem:[%s1012_s4] ss:$0 sm:$0xff]  ;;  %v463_v61 = vld [vmem:[%s1011_s3 + $0x78] sm:$0xff] }
  0x12   : > { %672 = vmatmul.mubr.msk.f32.vlgmr.msra.gmra.mrb[0].mxu0 %vm266_vm0, %v256_v18  ;;  %763 = vmatpush3.bf16.msra.mxu1 %v760_v14  ;;  %v808_v52 = vpack.c.bf16 %v461_v51, %v460_v50  ;;  %v812_v62 = vpack.c.bf16 %v463_v61, %v462_v60  ;;  %v617_v63 = vld [vmem:[%s1012_s4 + $0x1] ss:$0 sm:$0xff]  ;;  %v618_v6 = vld [vmem:[%s1013_s5] ss:$0 sm:$0xff] }
  0x13   : > { %765 = vmatprep.subr.bf16.mxu1 %v764_v19  ;;  %787 = vmatpush3.bf16.msra.mxu0 %v784_v35 }
  0x14   : > { %789 = vmatprep.subr.bf16.mxu0 %v788_v37 }
  0x16   : > { %767 = vmatpush3.bf16.msra.mxu1 %v764_v19 }
  0x17   : > { %769 = vmatprep.subr.bf16.mxu1 %v768_v22  ;;  %791 = vmatpush3.bf16.msra.mxu0 %v788_v37 }
  0x18   : > { %793 = vmatprep.subr.bf16.mxu0 %v792_v40 }
  0x1a   : > { %771 = vmatpush3.bf16.msra.mxu1 %v768_v22 }
  0x1b   : > { %773 = vmatprep.subr.bf16.mxu1 %v772_v25  ;;  %795 = vmatpush3.bf16.msra.mxu0 %v792_v40 }
  0x1c   : > { %797 = vmatprep.subr.bf16.mxu0 %v796_v43 }
  0x1e   : > { %775 = vmatpush3.bf16.msra.mxu1 %v772_v25 }
  0x1f   : > { %777 = vmatprep.subr.bf16.mxu1 %v776_v28  ;;  %799 = vmatpush3.bf16.msra.mxu0 %v796_v43 }
  0x20   : > { %801 = vmatprep.subr.bf16.mxu0 %v800_v46 }
  0x22   : > { %779 = vmatpush3.bf16.msra.mxu1 %v776_v28 }
  0x23   : > { %781 = vmatprep.subr.bf16.mxu1 %v780_v31  ;;  %803 = vmatpush3.bf16.msra.mxu0 %v800_v46 }
  0x24   : > { %805 = vmatprep.subr.bf16.mxu0 %v804_v49 }
  0x26   : > { %783 = vmatpush3.bf16.msra.mxu1 %v780_v31 }
  0x27   : > { %807 = vmatpush3.bf16.msra.mxu0 %v804_v49 }
  0x28   : > { %809 = vmatprep.subr.bf16.mxu0 %v808_v52 }
  0x2b   : > { %811 = vmatpush3.bf16.msra.mxu0 %v808_v52 }
  0x2c   : > { %813 = vmatprep.subr.bf16.mxu0 %v812_v62 }
  0x2f   : > { %815 = vmatpush3.bf16.msra.mxu0 %v812_v62 }
  0xe5   : > { %v673_v54 = vpop.f32.mrb[0].mxu0 }
  0xe6   : > { %v345_v55 = vadd.f32 %v673_v54, %v614_v53  ;;  %v339_v56 = vpop.f32.mrb[1].mxu0 }
  0xe7   : > { %v340_v57 = vadd.f32 %v614_v53, %v339_v56 }
  0xe8   : > { %v349_v59 = vmax.f32 %v345_v55, 0.0 }
  0xe9   : > { %v348_v58 = vmax.f32 %v340_v57, 0.0 }
  0xeb   : > { %706 = vmatprep.mubr.f32.mxu1 %v348_v58 }
  0xec   : > { %707 = vmatmul.mubr.f32.vlgmr.msra.gmra.mrb[0].mxu1 %v349_v59 }
 0x1bf   : > { %v708_v0 = vpop.f32.mrb[0].mxu1 }
 0x1c0   : > { %v443_v1 = vadd.f32 %v708_v0, %v617_v63  ;;  %v437_v2 = vpop.f32.mrb[1].mxu1 }
 0x1c1   : > { %v438_v3 = vadd.f32 %v617_v63, %v437_v2 }
 0x1c2   : > { %v447_v5 = vmax.f32 %v443_v1, 0.0 }
 0x1c3   : > { %v446_v4 = vmax.f32 %v438_v3, 0.0 }
 0x1c5   : > { %741 = vmatprep.mubr.f32.mxu0 %v446_v4 }
 0x1c6   : > { %742 = vmatmul.mubr.f32.vlgmr.msra.gmra.mrb[2].mxu0 %v447_v5 }
 0x299   : > { %v743_v7 = vpop.f32.mrb[2].mxu0 }
 0x29a   : > { %v537_v8 = vpop.f32.mrb[3].mxu0  ;;  %v543_v10 = vadd.f32 %v743_v7, %v618_v6 }
 0x29b   : > { %v538_v9 = vadd.f32 %v618_v6, %v537_v8 }
 0x29c   : > { %548 = vst.msk [vmem:[%s253_s22 + $0x8] sm:$0xff] %vm546_vm1, %v543_v10 }
 0x29d   : > { %547 = vst.msk [vmem:[%s253_s22] sm:$0xff] %vm546_vm1, %v538_v9 }
 0x29e PF: > { %s16_s21 = sadd.s32 1, %s830_s21  }
 0x29f   : > { %p13_p4 = scmp.ge.s32.totalorder %s16_s21, 4  }
 0x2a1   :  { %15 = sbr.rel (!%p13_p4) target bundleno = 1 (0x1), region = 74 }

</bundles_post_ra>
